<compile_context>
chip_gen: v6e
topology: v6e:2x2x1
jax: 0.10.0
libtpu: 0.0.40
codegen_flags: <defaults>
</compile_context>

<pallas_src>
import jax
import jax.numpy as jnp
from jax.experimental import pallas as pl
from jax.experimental.pallas import tpu as pltpu


# Only bother with multiple outstanding DMA descriptors for inputs big enough
# for it to matter; below this a single descriptor already hides issue latency.
_CHUNK_THRESHOLD_BYTES = 4 * 1024 * 1024
_MAX_OUTSTANDING_COPIES = 4


def _chunk_starts_sizes(length: int, n_chunks: int):
    """Split range [0, length) into up to n_chunks contiguous static chunks."""
    base, rem = divmod(length, n_chunks)
    chunks = []
    start = 0
    for i in range(n_chunks):
        size = base + (1 if i < rem else 0)
        if size > 0:
            chunks.append((start, size))
        start += size
    return tuple(chunks)


def _make_dma_identity_kernel(chunks):
    """Kernel factory: closes over static (start, size) leading-dim chunks."""

    def kernel(x_hbm, o_hbm, sems):
        # Issue all HBM->HBM copies first (multiple outstanding descriptors),
        # then wait on each semaphore.  No VMEM, no vector-unit work.
        copies = []
        for idx, (start, size) in enumerate(chunks):
            cp = pltpu.make_async_copy(
                x_hbm.at[pl.ds(start, size)],
                o_hbm.at[pl.ds(start, size)],
                sems.at[idx],
            )
            cp.start()
            copies.append(cp)
        for cp in copies:
            cp.wait()

    return kernel


def signal_layer_forward_view(x: jax.Array) -> jax.Array:
    """Zero-cost identity for callers that do not need a materialized copy."""
    return x


@jax.jit
def signal_layer_forward(x: jax.Array) -> jax.Array:
    """Identity forward of SignalLayer as a single HBM->HBM DMA copy."""
    orig_shape = x.shape
    dtype = x.dtype
    nbytes = x.size * x.dtype.itemsize

    # Nothing to copy for empty tensors.
    if x.size == 0:
        return x

    # Canonical >=2-D view so we can chunk along a leading dim.  Collapsing /
    # adding leading dims is a free reshape — no relayout, no extra HBM pass.
    if x.ndim == 0:
        view = x.reshape(1, 1)
    elif x.ndim == 1:
        view = x.reshape(1, orig_shape[0])
    else:
        view = x
    leading = view.shape[0]

    if nbytes >= _CHUNK_THRESHOLD_BYTES and leading >= 2:
        n_chunks = min(_MAX_OUTSTANDING_COPIES, leading)
    else:
        n_chunks = 1
    chunks = _chunk_starts_sizes(leading, n_chunks)

    out = pl.pallas_call(
        _make_dma_identity_kernel(chunks),
        out_shape=jax.ShapeDtypeStruct(view.shape, dtype),
        # Leave both operands in HBM; the kernel moves bytes with the DMA
        # engine directly, bypassing VMEM entirely.
        in_specs=[pl.BlockSpec(memory_space=pl.ANY)],
        out_specs=pl.BlockSpec(memory_space=pl.ANY),
        scratch_shapes=[pltpu.SemaphoreType.DMA((len(chunks),))],
        cost_estimate=pl.CostEstimate(
            flops=0,
            transcendentals=0,
            bytes_accessed=2 * nbytes,  # 1x read + 1x write
        ),
    )(view)

    # Free reshape back to the caller's layout.
    return out.reshape(orig_shape)


# TODO(synk): torch.cuda.Event timing (recorder_1/recorder_2) and the
# input_queue are host-side instrumentation with no device compute; only the
# nn.Identity forward is reproduced here.


if __name__ == "__main__":
    key = jax.random.PRNGKey(0)
    # Small NCHW-like feature tensor consistent with the module's generic input.
    x = jax.random.normal(key, (2, 4, 16, 16), dtype=jnp.float32)

    y = signal_layer_forward(x)
    y = jax.block_until_ready(y)

    assert y.shape == x.shape and y.dtype == x.dtype
    assert bool(jnp.array_equal(y, x))
    print("KERNEL_OK")
</pallas_src>

<mosaic_0001>
module attributes {stable_mosaic.version = 11 : i64} {
  func.func @kernel(%arg0: memref<2x4x16x16xf32, #tpu.memory_space<any>>, %arg1: memref<2x4x16x16xf32, #tpu.memory_space<any>>, %arg2: memref<1x!tpu.dma_semaphore, #tpu.memory_space<semaphore_mem>>) attributes {dimension_semantics = [], scalar_prefetch = 0 : i64, scratch_operands = 1 : i64, tpu.core_type = #tpu.core_type<tc>} {
    %c0_i32 = arith.constant 0 : i32
    %c0_i32_0 = arith.constant 0 : i32
    %c0_i32_1 = arith.constant 0 : i32
    %c0_i32_2 = arith.constant 0 : i32
    %c0_i32_3 = arith.constant 0 : i32
    %0 = tpu.memref_slice %arg0[%c0_i32_0, %c0_i32_1, %c0_i32_2, %c0_i32_3] : memref<2x4x16x16xf32, #tpu.memory_space<any>> -> memref<2x4x16x16xf32, #tpu.memory_space<any>>
    %c0_i32_4 = arith.constant 0 : i32
    %c0_i32_5 = arith.constant 0 : i32
    %c0_i32_6 = arith.constant 0 : i32
    %c0_i32_7 = arith.constant 0 : i32
    %1 = tpu.memref_slice %arg1[%c0_i32_4, %c0_i32_5, %c0_i32_6, %c0_i32_7] : memref<2x4x16x16xf32, #tpu.memory_space<any>> -> memref<2x4x16x16xf32, #tpu.memory_space<any>>
    %2 = tpu.memref_slice %arg2[%c0_i32] : memref<1x!tpu.dma_semaphore, #tpu.memory_space<semaphore_mem>> -> memref<1x!tpu.dma_semaphore, #tpu.memory_space<semaphore_mem>>
    %3 = tpu.memref_squeeze %2 : memref<1x!tpu.dma_semaphore, #tpu.memory_space<semaphore_mem>> -> memref<!tpu.dma_semaphore, #tpu.memory_space<semaphore_mem>>
    tpu.enqueue_dma source(%0 : memref<2x4x16x16xf32, #tpu.memory_space<any>>) target(%1 : memref<2x4x16x16xf32, #tpu.memory_space<any>>) target_semaphore(%3 : memref<!tpu.dma_semaphore, #tpu.memory_space<semaphore_mem>>)
    %c0_i32_8 = arith.constant 0 : i32
    %c0_i32_9 = arith.constant 0 : i32
    %c0_i32_10 = arith.constant 0 : i32
    %c0_i32_11 = arith.constant 0 : i32
    %c0_i32_12 = arith.constant 0 : i32
    %4 = tpu.memref_slice %arg0[%c0_i32_9, %c0_i32_10, %c0_i32_11, %c0_i32_12] : memref<2x4x16x16xf32, #tpu.memory_space<any>> -> memref<2x4x16x16xf32, #tpu.memory_space<any>>
    %c0_i32_13 = arith.constant 0 : i32
    %c0_i32_14 = arith.constant 0 : i32
    %c0_i32_15 = arith.constant 0 : i32
    %c0_i32_16 = arith.constant 0 : i32
    %5 = tpu.memref_slice %arg1[%c0_i32_13, %c0_i32_14, %c0_i32_15, %c0_i32_16] : memref<2x4x16x16xf32, #tpu.memory_space<any>> -> memref<2x4x16x16xf32, #tpu.memory_space<any>>
    %6 = tpu.memref_slice %arg2[%c0_i32_8] : memref<1x!tpu.dma_semaphore, #tpu.memory_space<semaphore_mem>> -> memref<1x!tpu.dma_semaphore, #tpu.memory_space<semaphore_mem>>
    %7 = tpu.memref_squeeze %6 : memref<1x!tpu.dma_semaphore, #tpu.memory_space<semaphore_mem>> -> memref<!tpu.dma_semaphore, #tpu.memory_space<semaphore_mem>>
    tpu.wait_dma2 semaphore(%7 : memref<!tpu.dma_semaphore, #tpu.memory_space<semaphore_mem>>) src(%4 : memref<2x4x16x16xf32, #tpu.memory_space<any>>) dst(%5 : memref<2x4x16x16xf32, #tpu.memory_space<any>>)
    return
  }
}

</mosaic_0001>

<bundles_post_ra>
// kernel: signal_layer_forward.1
= control target key start
LH: loop header
LB: loop body
LE: loop exit
PB: predicated region body
PF: predicated region fallthrough
CT: control target
= control target key end

     0   :  { %s30_s6 = smov [#allocation2]   ;;  %s31_s7 = smov 131072   ;;  %s49_s0 = inlined_call_operand.hbm [shape: f32[2,4,16,16], index: 0, kind: input, shape index: {}]   ;;  %s50_s1 = inlined_call_operand.hbm [shape: f32[2,4,16,16], index: 1, kind: output, shape index: {}]  }
   0x1   :  { %s32_s8 = smov 0  }
   0x2   :  { %12 = dma.general %s49_s0, 2048, %s50_s1, %s30_s6, %s31_s7, [#allocation4], %s32_s8, 0  }
   0x3   :  { %28 = dma.done.wait [#allocation2], 2048 }
   0x4   :  { %29 = vsyncadd [#allocation2], 4294965248 }
   0x5   :  { %18 = vsyncmov [#allocation2] }
   0x8   :  { %s19_s13 = vpop.sfrf %18 }
   0x9   :  { %p24_p0 = scmp.ne.s32.totalorder %s19_s13, 0 }
   0xb   :  { %23 = shalt.err (%p24_p0)  }

</bundles_post_ra>
